<compile_context>
chip_gen: v5e
topology: v5e:2x2
jax: 0.10.0
libtpu: 0.0.40
codegen_flags: <defaults>
</compile_context>

<pallas_src>
import functools

import jax
import jax.numpy as jnp
from jax.experimental import pallas as pl
from jax.experimental.pallas import tpu as pltpu


K_LANES = 128  # lane-dense (padded) im2col K dimension


# ----------------------------------------------------------------------------
# Fused kernel: conv(im2col matmul)+ReLU -> 1x1 conv+ReLU -> MXU GAP -> head
# -> fused pose heads (+ quaternion normalize).  One grid step == B_BLK images.
# ----------------------------------------------------------------------------
def _spen_fused_kernel(x_ref, wc_ref, bc_ref, wn_ref, bn_ref,
                       wf_ref, bf_ref, wh_ref, bh_ref, out_ref):
    b_blk = out_ref.shape[0]
    rows = x_ref.shape[0]
    m = rows // b_blk                                   # spatial positions / image

    # backbone: 3x3/s2 conv as ONE im2col matmul (K pre-padded to 128 lanes)
    conv = jnp.dot(x_ref[...], wc_ref[...], preferred_element_type=jnp.float32)
    conv = jnp.maximum(conv + bc_ref[...], 0.0)         # (rows, c_back) f32

    # neck: 1x1 conv (channel matmul) + ReLU
    neck = jnp.dot(conv.astype(jnp.bfloat16), wn_ref[...],
                   preferred_element_type=jnp.float32)
    neck = jnp.maximum(neck + bn_ref[...], 0.0)         # (rows, c_neck) f32

    # head GAP: per-image mean as an MXU matmul with an in-kernel
    # block-diagonal averaging matrix (keeps the cross-row reduce off VPU/XLU).
    r = jax.lax.broadcasted_iota(jnp.int32, (b_blk, rows), 1)
    b = jax.lax.broadcasted_iota(jnp.int32, (b_blk, rows), 0)
    pool = jnp.where((r >= b * m) & (r < (b + 1) * m), 1.0 / m, 0.0)
    pooled = jnp.dot(pool, neck, preferred_element_type=jnp.float32)  # (b_blk, c_neck)

    # fused (pos_feature | ori_feature) projection + ReLU
    feat = jnp.dot(pooled, wf_ref[...], preferred_element_type=jnp.float32)
    feat = jnp.maximum(feat + bf_ref[...], 0.0)         # (b_blk, 2*feat)

    # fused pose heads -> (b_blk, 8): cols 0:3 pos, 3:7 raw quaternion, 7 pad
    head = jnp.dot(feat, wh_ref[...], preferred_element_type=jnp.float32) + bh_ref[...]
    lane = jax.lax.broadcasted_iota(jnp.int32, head.shape, 1)
    is_ori = (lane >= 3) & (lane < 7)
    ssq = jnp.sum(jnp.where(is_ori, head * head, 0.0), axis=-1, keepdims=True)
    inv_norm = jax.lax.rsqrt(ssq + 1e-12)
    out_ref[...] = jnp.where(is_ori, head * inv_norm, head)


# ----------------------------------------------------------------------------
# Parameters: base ("torch-like") params + kernel-ready prepped params
# ----------------------------------------------------------------------------
def make_params(cin=4, c_back=32, c_neck=64, feat=32, key=jax.random.PRNGKey(42)):
    ks = jax.random.split(key, 12)

    def init(k, shape, fan_in):
        return jax.random.normal(k, shape, jnp.float32) / jnp.sqrt(fan_in)

    return dict(
        conv_w=init(ks[0], (c_back, cin, 3, 3), cin * 9),   # OIHW
        conv_b=init(ks[1], (c_back,), 1.0),
        neck_w=init(ks[2], (c_back, c_neck), c_back),        # (in, out)
        neck_b=init(ks[3], (c_neck,), 1.0),
        posf_w=init(ks[4], (c_neck, feat), c_neck),
        posf_b=init(ks[5], (feat,), 1.0),
        orif_w=init(ks[6], (c_neck, feat), c_neck),
        orif_b=init(ks[7], (feat,), 1.0),
        pos_w=init(ks[8], (feat, 3), feat),
        pos_b=init(ks[9], (3,), 1.0),
        ori_w=init(ks[10], (feat, 4), feat),
        ori_b=init(ks[11], (4,), 1.0),
    )


def prep_params(p):
    c_back, cin, _, _ = p["conv_w"].shape
    c_neck = p["neck_w"].shape[1]
    feat = p["posf_w"].shape[1]
    k = 9 * cin
    assert k <= K_LANES

    # conv OIHW -> im2col weight (kh, kw, cin, c_back), zero-padded K -> 128
    w_conv = p["conv_w"].transpose(2, 3, 1, 0).reshape(k, c_back)
    w_conv = jnp.pad(w_conv, ((0, K_LANES - k), (0, 0)))

    # fused pose-head weight/bias: block-diagonal so each head reads only its
    # own feature half; cols 0:3 pos, 3:7 ori, 7 zero pad.
    w_head = jnp.zeros((2 * feat, 8), jnp.float32)
    w_head = w_head.at[:feat, 0:3].set(p["pos_w"])
    w_head = w_head.at[feat:, 3:7].set(p["ori_w"])
    b_head = jnp.zeros((1, 8), jnp.float32)
    b_head = b_head.at[0, 0:3].set(p["pos_b"])
    b_head = b_head.at[0, 3:7].set(p["ori_b"])

    return dict(
        w_conv=w_conv.astype(jnp.bfloat16),
        b_conv=p["conv_b"].reshape(1, c_back),
        w_neck=p["neck_w"].astype(jnp.bfloat16),
        b_neck=p["neck_b"].reshape(1, c_neck),
        w_feat=jnp.concatenate([p["posf_w"], p["orif_w"]], axis=1),
        b_feat=jnp.concatenate([p["posf_b"], p["orif_b"]]).reshape(1, 2 * feat),
        w_head=w_head,
        b_head=b_head,
    )


# ----------------------------------------------------------------------------
# Batch-block sizing: amortize per-step overhead, stay VMEM-safe on all chips,
# and keep >=2 grid steps so v7x's two TensorCores both get work.
# ----------------------------------------------------------------------------
def _choose_b_blk(n, m, k_pad):
    target_rows = 512                          # ~85% of roofline territory
    b = max(1, target_rows // max(m, 1))
    # conservative per-image VMEM: double-buffered bf16 input + f32 conv/neck
    # intermediates (each padded to 128 lanes); keep under ~24 MiB everywhere
    # (v7x: 64 MiB physical, 32 MiB default scoped).
    per_img = m * (k_pad * 2 * 2 + 2 * 128 * 4)
    b = min(b, max(1, (24 * 1024 * 1024) // per_img))
    b = min(b, n)
    if n >= 2:
        b = min(b, max(1, n // 2))
    return max(1, b)


# ----------------------------------------------------------------------------
# Forward pass
# ----------------------------------------------------------------------------
def spen_forward(kp, x_nchw):
    n, cin, h, w = x_nchw.shape
    assert h % 2 == 0 and w % 2 == 0, "stride-2 backbone assumes even spatial dims"
    ho, wo = h // 2, w // 2
    m = ho * wo
    k = 9 * cin
    k_pad = kp["w_conv"].shape[0]
    c_back, c_neck = kp["w_neck"].shape
    two_feat = kp["w_feat"].shape[1]

    # Wrapper-side im2col: lane-dense (m, 128) bf16 patches per image.
    xp = jnp.pad(x_nchw, ((0, 0), (0, 0), (1, 1), (1, 1)))
    cols = [xp[:, :, kh:kh + 2 * ho:2, kw:kw + 2 * wo:2]
            for kh in range(3) for kw in range(3)]
    patches = jnp.stack(cols, axis=1)                       # (n, 9, cin, ho, wo)
    patches = patches.transpose(0, 3, 4, 1, 2).reshape(n, m, k)
    patches = jnp.pad(patches, ((0, 0), (0, 0), (0, k_pad - k)))

    b_blk = _choose_b_blk(n, m, k_pad)
    grid_len = pl.cdiv(n, b_blk)
    n_pad = grid_len * b_blk
    if n_pad != n:
        patches = jnp.pad(patches, ((0, n_pad - n), (0, 0), (0, 0)))
    x_in = patches.reshape(grid_len, b_blk * m, k_pad).astype(jnp.bfloat16)

    def const_spec(arr):
        nd = arr.ndim
        return pl.BlockSpec(arr.shape, lambda g, _nd=nd: (0,) * _nd)

    in_specs = [
        pl.BlockSpec((None, b_blk * m, k_pad), lambda g: (g, 0, 0)),
        const_spec(kp["w_conv"]), const_spec(kp["b_conv"]),
        const_spec(kp["w_neck"]), const_spec(kp["b_neck"]),
        const_spec(kp["w_feat"]), const_spec(kp["b_feat"]),
        const_spec(kp["w_head"]), const_spec(kp["b_head"]),
    ]
    out_specs = pl.BlockSpec((None, b_blk, 8), lambda g: (g, 0, 0))
    out_shape = jax.ShapeDtypeStruct((grid_len, b_blk, 8), jnp.float32)

    flops = int(n_pad * m * 2 * (k_pad * c_back + c_back * c_neck)
                + grid_len * 2 * b_blk * b_blk * m * c_neck
                + n_pad * 2 * (c_neck * two_feat + two_feat * 8))
    bytes_accessed = int(
        x_in.size * x_in.dtype.itemsize
        + sum(int(v.size) * v.dtype.itemsize for v in kp.values())
        + n_pad * 8 * 4)

    out = pl.pallas_call(
        _spen_fused_kernel,
        grid=(grid_len,),
        in_specs=in_specs,
        out_specs=out_specs,
        out_shape=out_shape,
        compiler_params=pltpu.CompilerParams(
            dimension_semantics=("parallel",),        # batch blocks across TCs
            vmem_limit_bytes=32 * 1024 * 1024),
        cost_estimate=pl.CostEstimate(flops=flops, transcendentals=n_pad,
                                      bytes_accessed=bytes_accessed),
    )(x_in, kp["w_conv"], kp["b_conv"], kp["w_neck"], kp["b_neck"],
      kp["w_feat"], kp["b_feat"], kp["w_head"], kp["b_head"])

    out = out.reshape(n_pad, 8)
    pos_pre_dict = {"pos": out[:n, 0:3]}
    ori_pre_dict = {"ori": out[:n, 3:7]}
    return pos_pre_dict, ori_pre_dict


# ----------------------------------------------------------------------------
# Pure-JAX (XLA) reference of the same forward pass, for validation
# ----------------------------------------------------------------------------
def reference_forward(p, x_nchw):
    y = jax.lax.conv_general_dilated(
        x_nchw, p["conv_w"], window_strides=(2, 2), padding=((1, 1), (1, 1)),
        dimension_numbers=("NCHW", "OIHW", "NCHW"))
    y = jnp.maximum(y + p["conv_b"][None, :, None, None], 0.0)
    z = jnp.einsum("nchw,cd->ndhw", y, p["neck_w"])
    z = jnp.maximum(z + p["neck_b"][None, :, None, None], 0.0)
    pooled = z.mean(axis=(2, 3))
    pos_f = jnp.maximum(pooled @ p["posf_w"] + p["posf_b"], 0.0)
    ori_f = jnp.maximum(pooled @ p["orif_w"] + p["orif_b"], 0.0)
    pos = pos_f @ p["pos_w"] + p["pos_b"]
    q = ori_f @ p["ori_w"] + p["ori_b"]
    ori = q * jax.lax.rsqrt(jnp.sum(q * q, axis=-1, keepdims=True) + 1e-12)
    return pos, ori


if __name__ == "__main__":
    key = jax.random.PRNGKey(0)
    x = jax.random.normal(key, (2, 4, 16, 16), jnp.float32)   # NCHW, like PyTorch

    base_params = make_params(cin=4)
    kparams = prep_params(base_params)

    fwd = jax.jit(functools.partial(spen_forward, kparams))
    pos_dict, ori_dict = fwd(x)
    jax.block_until_ready((pos_dict["pos"], ori_dict["ori"]))

    assert pos_dict["pos"].shape == (2, 3)
    assert ori_dict["ori"].shape == (2, 4)

    # quaternions are unit-normalized
    norms = jnp.linalg.norm(ori_dict["ori"], axis=-1)
    assert bool(jnp.allclose(norms, 1.0, atol=1e-3))

    # numerical cross-check against the pure-XLA reference (bf16 MXU tolerance)
    ref_pos, ref_ori = jax.jit(functools.partial(reference_forward, base_params))(x)
    assert bool(jnp.allclose(pos_dict["pos"], ref_pos, rtol=3e-2, atol=3e-2))
    assert bool(jnp.allclose(ori_dict["ori"], ref_ori, rtol=3e-2, atol=3e-2))

    print("KERNEL_OK")
</pallas_src>

<mosaic_0001>
module attributes {stable_mosaic.version = 11 : i64} {
  func.func @_spen_fused_kernel(%arg0: i32, %arg1: memref<1x64x128xbf16, #tpu.memory_space<vmem>>, %arg2: memref<128x32xbf16, #tpu.memory_space<vmem>>, %arg3: memref<1x32xf32, #tpu.memory_space<vmem>>, %arg4: memref<32x64xbf16, #tpu.memory_space<vmem>>, %arg5: memref<1x64xf32, #tpu.memory_space<vmem>>, %arg6: memref<64x64xf32, #tpu.memory_space<vmem>>, %arg7: memref<1x64xf32, #tpu.memory_space<vmem>>, %arg8: memref<64x8xf32, #tpu.memory_space<vmem>>, %arg9: memref<1x8xf32, #tpu.memory_space<vmem>>, %arg10: memref<1x1x8xf32, #tpu.memory_space<vmem>>) attributes {dimension_semantics = [#tpu.dimension_semantics<parallel>], iteration_bounds = array<i64: 2>, scalar_prefetch = 0 : i64, scratch_operands = 0 : i64, tpu.core_type = #tpu.core_type<tc>, window_params = [{transform_indices = @transform_0, window_bounds = array<i64: 1, 64, 128>}, {pipeline_mode = #tpu.pipeline_mode<synchronous>, transform_indices = @transform_1, window_bounds = array<i64: 128, 32>}, {pipeline_mode = #tpu.pipeline_mode<synchronous>, transform_indices = @transform_2, window_bounds = array<i64: 1, 32>}, {pipeline_mode = #tpu.pipeline_mode<synchronous>, transform_indices = @transform_3, window_bounds = array<i64: 32, 64>}, {pipeline_mode = #tpu.pipeline_mode<synchronous>, transform_indices = @transform_4, window_bounds = array<i64: 1, 64>}, {pipeline_mode = #tpu.pipeline_mode<synchronous>, transform_indices = @transform_5, window_bounds = array<i64: 64, 64>}, {pipeline_mode = #tpu.pipeline_mode<synchronous>, transform_indices = @transform_6, window_bounds = array<i64: 1, 64>}, {pipeline_mode = #tpu.pipeline_mode<synchronous>, transform_indices = @transform_7, window_bounds = array<i64: 64, 8>}, {pipeline_mode = #tpu.pipeline_mode<synchronous>, transform_indices = @transform_8, window_bounds = array<i64: 1, 8>}, {transform_indices = @transform_9, window_bounds = array<i64: 1, 1, 8>}]} {
    %c0 = arith.constant 0 : index
    %c0_0 = arith.constant 0 : index
    %c0_1 = arith.constant 0 : index
    %0 = vector.load %arg1[%c0, %c0_0, %c0_1] : memref<1x64x128xbf16, #tpu.memory_space<vmem>>, vector<1x64x128xbf16>
    %1 = vector.shape_cast %0 : vector<1x64x128xbf16> to vector<64x128xbf16>
    %c0_2 = arith.constant 0 : index
    %c0_3 = arith.constant 0 : index
    %2 = vector.load %arg2[%c0_2, %c0_3] : memref<128x32xbf16, #tpu.memory_space<vmem>>, vector<128x32xbf16>
    %cst = arith.constant dense<0.000000e+00> : vector<64x32xf32>
    %3 = tpu.matmul %1, %2, %cst {dimension_numbers = #tpu.dot_dimension_numbers<[1], [0], [0], [1], [0, 0, 1, 1], [], []>} : vector<64x128xbf16>, vector<128x32xbf16>, vector<64x32xf32> -> vector<64x32xf32>
    %c0_4 = arith.constant 0 : index
    %c0_5 = arith.constant 0 : index
    %4 = vector.load %arg3[%c0_4, %c0_5] : memref<1x32xf32, #tpu.memory_space<vmem>>, vector<1x32xf32>
    %5 = vector.broadcast %4 : vector<1x32xf32> to vector<64x32xf32>
    %6 = arith.addf %3, %5 : vector<64x32xf32>
    %cst_6 = arith.constant 0.000000e+00 : f32
    %7 = vector.broadcast %cst_6 : f32 to vector<64x32xf32>
    %8 = arith.maximumf %6, %7 : vector<64x32xf32>
    %9 = arith.truncf %8 : vector<64x32xf32> to vector<64x32xbf16>
    %c0_7 = arith.constant 0 : index
    %c0_8 = arith.constant 0 : index
    %10 = vector.load %arg4[%c0_7, %c0_8] : memref<32x64xbf16, #tpu.memory_space<vmem>>, vector<32x64xbf16>
    %cst_9 = arith.constant dense<0.000000e+00> : vector<64x64xf32>
    %11 = tpu.matmul %9, %10, %cst_9 {dimension_numbers = #tpu.dot_dimension_numbers<[1], [0], [0], [1], [0, 0, 1, 1], [], []>} : vector<64x32xbf16>, vector<32x64xbf16>, vector<64x64xf32> -> vector<64x64xf32>
    %c0_10 = arith.constant 0 : index
    %c0_11 = arith.constant 0 : index
    %12 = vector.load %arg5[%c0_10, %c0_11] : memref<1x64xf32, #tpu.memory_space<vmem>>, vector<1x64xf32>
    %13 = vector.broadcast %12 : vector<1x64xf32> to vector<64x64xf32>
    %14 = arith.addf %11, %13 : vector<64x64xf32>
    %cst_12 = arith.constant 0.000000e+00 : f32
    %15 = vector.broadcast %cst_12 : f32 to vector<64x64xf32>
    %16 = arith.maximumf %14, %15 : vector<64x64xf32>
    %17 = tpu.iota {dimensions = array<i32: 1>} : vector<1x64xi32>
    %18 = tpu.iota {dimensions = array<i32: 0>} : vector<1x64xi32>
    %c64_i32 = arith.constant 64 : i32
    %19 = vector.broadcast %c64_i32 : i32 to vector<1x64xi32>
    %20 = arith.muli %18, %19 : vector<1x64xi32>
    %21 = arith.cmpi sge, %17, %20 : vector<1x64xi32>
    %c1_i32 = arith.constant 1 : i32
    %22 = vector.broadcast %c1_i32 : i32 to vector<1x64xi32>
    %23 = arith.addi %18, %22 : vector<1x64xi32>
    %c64_i32_13 = arith.constant 64 : i32
    %24 = vector.broadcast %c64_i32_13 : i32 to vector<1x64xi32>
    %25 = arith.muli %23, %24 : vector<1x64xi32>
    %26 = arith.cmpi slt, %17, %25 : vector<1x64xi32>
    %27 = arith.andi %21, %26 : vector<1x64xi1>
    %cst_14 = arith.constant 1.562500e-02 : f32
    %cst_15 = arith.constant 0.000000e+00 : f32
    %28 = vector.broadcast %cst_14 : f32 to vector<1x64xf32>
    %29 = vector.broadcast %cst_15 : f32 to vector<1x64xf32>
    %30 = arith.select %27, %28, %29 : vector<1x64xi1>, vector<1x64xf32>
    %cst_16 = arith.constant dense<0.000000e+00> : vector<1x64xf32>
    %31 = tpu.matmul %30, %16, %cst_16 {dimension_numbers = #tpu.dot_dimension_numbers<[1], [0], [0], [1], [0, 0, 1, 1], [], []>} : vector<1x64xf32>, vector<64x64xf32>, vector<1x64xf32> -> vector<1x64xf32>
    %c0_17 = arith.constant 0 : index
    %c0_18 = arith.constant 0 : index
    %32 = vector.load %arg6[%c0_17, %c0_18] : memref<64x64xf32, #tpu.memory_space<vmem>>, vector<64x64xf32>
    %cst_19 = arith.constant dense<0.000000e+00> : vector<1x64xf32>
    %33 = tpu.matmul %31, %32, %cst_19 {dimension_numbers = #tpu.dot_dimension_numbers<[1], [0], [0], [1], [0, 0, 1, 1], [], []>} : vector<1x64xf32>, vector<64x64xf32>, vector<1x64xf32> -> vector<1x64xf32>
    %c0_20 = arith.constant 0 : index
    %c0_21 = arith.constant 0 : index
    %34 = vector.load %arg7[%c0_20, %c0_21] : memref<1x64xf32, #tpu.memory_space<vmem>>, vector<1x64xf32>
    %35 = arith.addf %33, %34 : vector<1x64xf32>
    %cst_22 = arith.constant 0.000000e+00 : f32
    %36 = vector.broadcast %cst_22 : f32 to vector<1x64xf32>
    %37 = arith.maximumf %35, %36 : vector<1x64xf32>
    %c0_23 = arith.constant 0 : index
    %c0_24 = arith.constant 0 : index
    %38 = vector.load %arg8[%c0_23, %c0_24] : memref<64x8xf32, #tpu.memory_space<vmem>>, vector<64x8xf32>
    %cst_25 = arith.constant dense<0.000000e+00> : vector<1x8xf32>
    %39 = tpu.matmul %37, %38, %cst_25 {dimension_numbers = #tpu.dot_dimension_numbers<[1], [0], [0], [1], [0, 0, 1, 1], [], []>} : vector<1x64xf32>, vector<64x8xf32>, vector<1x8xf32> -> vector<1x8xf32>
    %c0_26 = arith.constant 0 : index
    %c0_27 = arith.constant 0 : index
    %40 = vector.load %arg9[%c0_26, %c0_27] : memref<1x8xf32, #tpu.memory_space<vmem>>, vector<1x8xf32>
    %41 = arith.addf %39, %40 : vector<1x8xf32>
    %42 = tpu.iota {dimensions = array<i32: 1>} : vector<1x8xi32>
    %c3_i32 = arith.constant 3 : i32
    %43 = vector.broadcast %c3_i32 : i32 to vector<1x8xi32>
    %44 = arith.cmpi sge, %42, %43 : vector<1x8xi32>
    %c7_i32 = arith.constant 7 : i32
    %45 = vector.broadcast %c7_i32 : i32 to vector<1x8xi32>
    %46 = arith.cmpi slt, %42, %45 : vector<1x8xi32>
    %47 = arith.andi %44, %46 : vector<1x8xi1>
    %48 = arith.mulf %41, %41 : vector<1x8xf32>
    %cst_28 = arith.constant 0.000000e+00 : f32
    %49 = vector.broadcast %cst_28 : f32 to vector<1x8xf32>
    %50 = arith.select %47, %48, %49 : vector<1x8xi1>, vector<1x8xf32>
    %cst_29 = arith.constant dense<0.000000e+00> : vector<1xf32>
    %51 = vector.multi_reduction <add>, %50, %cst_29 [1] : vector<1x8xf32> to vector<1xf32>
    %52 = vector.shape_cast %51 : vector<1xf32> to vector<1x1xf32>
    %cst_30 = arith.constant 9.99999996E-13 : f32
    %53 = vector.broadcast %cst_30 : f32 to vector<1x1xf32>
    %54 = arith.addf %52, %53 : vector<1x1xf32>
    %55 = math.rsqrt %54 : vector<1x1xf32>
    %56 = vector.broadcast %55 : vector<1x1xf32> to vector<1x8xf32>
    %57 = arith.mulf %41, %56 : vector<1x8xf32>
    %58 = arith.select %47, %57, %41 : vector<1x8xi1>, vector<1x8xf32>
    %c0_31 = arith.constant 0 : index
    %c0_32 = arith.constant 0 : index
    %c0_33 = arith.constant 0 : index
    %59 = vector.load %arg10[%c0_31, %c0_32, %c0_33] : memref<1x1x8xf32, #tpu.memory_space<vmem>>, vector<1x1x8xf32>
    %60 = vector.shape_cast %59 : vector<1x1x8xf32> to vector<1x8xf32>
    %61 = vector.shape_cast %58 : vector<1x8xf32> to vector<1x1x8xf32>
    tpu.vector_store %arg10[%c0_31, %c0_32, %c0_33], %61 {strides = array<i32>} : memref<1x1x8xf32, #tpu.memory_space<vmem>>, vector<1x1x8xf32>,
    return
  }
  func.func @transform_0(%arg0: i32) -> (i32, i32, i32) {
    %c0_i32 = arith.constant 0 : i32
    %c0_i32_0 = arith.constant 0 : i32
    %c0_i32_1 = arith.constant 0 : i32
    return %arg0, %c0_i32, %c0_i32_0 : i32, i32, i32
  }
  func.func @transform_1(%arg0: i32) -> (i32, i32) {
    %c0_i32 = arith.constant 0 : i32
    %c0_i32_0 = arith.constant 0 : i32
    %c0_i32_1 = arith.constant 0 : i32
    return %c0_i32, %c0_i32_0 : i32, i32
  }
  func.func @transform_2(%arg0: i32) -> (i32, i32) {
    %c0_i32 = arith.constant 0 : i32
    %c0_i32_0 = arith.constant 0 : i32
    %c0_i32_1 = arith.constant 0 : i32
    return %c0_i32, %c0_i32_0 : i32, i32
  }
  func.func @transform_3(%arg0: i32) -> (i32, i32) {
    %c0_i32 = arith.constant 0 : i32
    %c0_i32_0 = arith.constant 0 : i32
    %c0_i32_1 = arith.constant 0 : i32
    return %c0_i32, %c0_i32_0 : i32, i32
  }
  func.func @transform_4(%arg0: i32) -> (i32, i32) {
    %c0_i32 = arith.constant 0 : i32
    %c0_i32_0 = arith.constant 0 : i32
    %c0_i32_1 = arith.constant 0 : i32
    return %c0_i32, %c0_i32_0 : i32, i32
  }
  func.func @transform_5(%arg0: i32) -> (i32, i32) {
    %c0_i32 = arith.constant 0 : i32
    %c0_i32_0 = arith.constant 0 : i32
    %c0_i32_1 = arith.constant 0 : i32
    return %c0_i32, %c0_i32_0 : i32, i32
  }
  func.func @transform_6(%arg0: i32) -> (i32, i32) {
    %c0_i32 = arith.constant 0 : i32
    %c0_i32_0 = arith.constant 0 : i32
    %c0_i32_1 = arith.constant 0 : i32
    return %c0_i32, %c0_i32_0 : i32, i32
  }
  func.func @transform_7(%arg0: i32) -> (i32, i32) {
    %c0_i32 = arith.constant 0 : i32
    %c0_i32_0 = arith.constant 0 : i32
    %c0_i32_1 = arith.constant 0 : i32
    return %c0_i32, %c0_i32_0 : i32, i32
  }
  func.func @transform_8(%arg0: i32) -> (i32, i32) {
    %c0_i32 = arith.constant 0 : i32
    %c0_i32_0 = arith.constant 0 : i32
    %c0_i32_1 = arith.constant 0 : i32
    return %c0_i32, %c0_i32_0 : i32, i32
  }
  func.func @transform_9(%arg0: i32) -> (i32, i32, i32) {
    %c0_i32 = arith.constant 0 : i32
    %c0_i32_0 = arith.constant 0 : i32
    %c0_i32_1 = arith.constant 0 : i32
    return %arg0, %c0_i32, %c0_i32_0 : i32, i32, i32
  }
}

</mosaic_0001>

<bundles_post_ra>
// kernel: spen_forward.1
= control target key start
LH: loop header
LB: loop body
LE: loop exit
PB: predicated region body
PF: predicated region fallthrough
CT: control target
= control target key end

     0   :  { %s878_s30 = smov 0   ;;  %s1006_s0 = inlined_call_operand.vmem [shape: bf16[2,64,128], index: 0, kind: input, shape index: {}]   ;;  %s1007_s1 = inlined_call_operand.vmem [shape: bf16[128,32], index: 1, kind: input, shape index: {}]   ;;  %s1008_s2 = inlined_call_operand.vmem [shape: f32[1,32], index: 2, kind: input, shape index: {}]   ;;  %s1009_s3 = inlined_call_operand.vmem [shape: bf16[32,64], index: 3, kind: input, shape index: {}]   ;;  %s1010_s4 = inlined_call_operand.vmem [shape: f32[1,64], index: 4, kind: input, shape index: {}]   ;;  %s1011_s5 = inlined_call_operand.vmem [shape: f32[64,64], index: 5, kind: input, shape index: {}]   ;;  %s1012_s6 = inlined_call_operand.vmem [shape: f32[1,64], index: 6, kind: input, shape index: {}]   ;;  %s1013_s7 = inlined_call_operand.vmem [shape: f32[64,8], index: 7, kind: input, shape index: {}]   ;;  %s1014_s8 = inlined_call_operand.vmem [shape: f32[1,8], index: 8, kind: input, shape index: {}]   ;;  %s1015_s9 = inlined_call_operand.vmem [shape: f32[2,1,8], index: 9, kind: output, shape index: {}]  }
   0x1 LB: > { %s711_s10 = sadd.s32 4294967295, %s825_s30   ;;  %p715_p0 = scmp.ge.s32.totalorder %s825_s30, 1  ;;  %s825_s30 = sphi %s878_s30, %s19_s30  }
   0x2   : > { %p287_p1 = scmp.lt.s32.totalorder %s825_s30, 3 }
   0x4   : > { %p288_p2 = pnand %p715_p0, %p287_p1 }
   0x5   : > { %p321_p3 = scmp.lt.s32.totalorder (!%p288_p2), %s711_s10, 1 }
   0x6   : > { %291 = sbr.rel (%p288_p2) target bundleno = 930 (0x3a2), region = 56 }
   0xb   : > { %v795_v0 = vld [vmem:[%s1007_s1 + $0x38] sm:$0xff]  ;;  %v794_v1 = vld [vmem:[%s1007_s1 + $0x30] sm:$0xff]  ;;  %v793_v2 = vld [vmem:[%s1007_s1 + $0x28] sm:$0xff]  ;;  %s1019_s10 = smov (!%p321_p3, %s711_s10), 1  ;;  %vm491_vm0 = vcmask 261120   ;;  %v541_v55 = vlaneseq  ;;  %vm552_vm4 = vcmask 523264  }
   0xc   : > { %430 = vmatpush.bf16.msra.mxu0 %v795_v0  ;;  %798 = vmatpush.bf16.msra.mxu3 %v795_v0  ;;  %v792_v3 = vld [vmem:[%s1007_s1 + $0x20] sm:$0xff]  ;;  %v791_v4 = vld [vmem:[%s1007_s1 + $0x18] sm:$0xff]  ;;  %v790_v5 = vld [vmem:[%s1007_s1 + $0x10] sm:$0xff]  ;;  %s783_s25 = sshll.u32 %s1019_s10, 5  ;;  %vm646_vm8 = vcmask 57344   ;;  %s328_s20 = scalar_lea.vmem %s1015_s9, %s1019_s10 }
   0xd   : > { %v789_v6 = vld [vmem:[%s1007_s1 + $0x8] sm:$0xff]  ;;  %v788_v7 = vld [vmem:[%s1007_s1] sm:$0xff]  ;;  %s325_s11 = scalar_lea.vmem %s1006_s0, %s783_s25  ;;  %v583_v49 = vld [vmem:[%s1011_s5 + $0x38] sm:$0xff]  ;;  %v544_v59 = vshrl.u32 %v541_v55, 7 }
   0xe   : > { %v784_v8 = vld [vmem:[%s325_s11] sm:$0xff]  ;;  %v786_v9 = vld [vmem:[%s325_s11 + $0x10] sm:$0xff]  ;;  %v785_v10 = vld [vmem:[%s325_s11 + $0x8] sm:$0xff] }
   0xf   : > { %v787_v11 = vld [vmem:[%s325_s11 + $0x18] sm:$0xff]  ;;  %v797_v12 = vld [vmem:[%s1009_s3 + $0x8] sm:$0xff]  ;;  %v796_v13 = vld [vmem:[%s1009_s3] sm:$0xff] }
  0x10   : > { %431 = vmatpush.bf16.msra.mxu0 %v794_v1  ;;  %799 = vmatpush.bf16.msra.mxu3 %v794_v1  ;;  %v815_v15 = vld [vmem:[%s1008_s2] ss:$0 sm:$0xff]  ;;  %v582_v50 = vld [vmem:[%s1011_s5 + $0x30] sm:$0xff]  ;;  %v581_v51 = vld [vmem:[%s1011_s5 + $0x28] sm:$0xff] }
  0x11   : > { %510 = vmatpush.bf16.msra.mxu1 %v797_v12  ;;  %v580_v53 = vld [vmem:[%s1011_s5 + $0x20] sm:$0xff]  ;;  %v579_v54 = vld [vmem:[%s1011_s5 + $0x18] sm:$0xff]  ;;  %v578_v56 = vld [vmem:[%s1011_s5 + $0x10] sm:$0xff] }
  0x12   : > { %v577_v57 = vld [vmem:[%s1011_s5 + $0x8] sm:$0xff]  ;;  %v816_v58 = vld [vmem:[%s1010_s4] ss:$0 sm:$0xff] }
  0x13   : > { %v576_v61 = vld [vmem:[%s1011_s5] sm:$0xff] }
  0x14   : > { %432 = vmatpush.bf16.msra.mxu0 %v793_v2  ;;  %800 = vmatpush.bf16.msra.mxu3 %v793_v2  ;;  %v547_v2 = vadd.s32 1, %v544_v59 }
  0x15   : > { %511 = vmatpush.bf16.msra.mxu1 %v796_v13 }
  0x18   : > { %433 = vmatpush.bf16.msra.mxu0 %v792_v3  ;;  %801 = vmatpush.bf16.msra.mxu3 %v792_v3 }
  0x1c   : > { %434 = vmatpush.bf16.msra.mxu0 %v791_v4  ;;  %802 = vmatpush.bf16.msra.mxu3 %v791_v4 }
  0x20   : > { %435 = vmatpush.bf16.msra.mxu0 %v790_v5  ;;  %803 = vmatpush.bf16.msra.mxu3 %v790_v5 }
  0x24   : > { %436 = vmatpush.bf16.msra.mxu0 %v789_v6  ;;  %804 = vmatpush.bf16.msra.mxu3 %v789_v6 }
  0x28   : > { %437 = vmatpush.bf16.msra.mxu0 %v788_v7  ;;  %805 = vmatpush.bf16.msra.mxu3 %v788_v7  ;;  %v542_v7 = vand.u32 127, %v541_v55 }
  0x2a   : > { %vm641_vm5 = vcmp.ge.s32.totalorder %v542_v7, 3  ;;  %vm642_vm6 = vcmp.lt.s32.totalorder %v542_v7, 7 }
  0x2b   : > { %438 = vmatmul.bf16.vlgmr.msra.gmra.mxu0 %v784_v8  ;;  %448 = vmatmul.bf16.vlgmr.msra.gmra.mxu3 %v786_v9  ;;  %v545_v8 = vmul.u32 64, %v544_v59  ;;  %v548_v9 = vmul.u32 64, %v547_v2  ;;  %vm989_vm7 = vmand %vm641_vm5, %vm642_vm6 }
  0x2c   : > { %596 = vmatpush.msrb.mxu3 %v583_v49 }
  0x2d   : > { %vm546_vm1 = vcmp.ge.s32.totalorder %v542_v7, %v545_v8  ;;  %vm549_vm2 = vcmp.lt.s32.totalorder %v542_v7, %v548_v9 }
  0x2e   : > { %597 = vmatpush.msrb.mxu3 %v582_v50  ;;  %vm550_vm3 = vmand %vm546_vm1, %vm549_vm2 }
  0x30   : > { %598 = vmatpush.msrb.mxu3 %v581_v51 }
  0x32   : > { %599 = vmatpush.msrb.mxu3 %v580_v53 }
  0x34   : > { %600 = vmatpush.msrb.mxu3 %v579_v54 }
  0x36   : > { %601 = vmatpush.msrb.mxu3 %v578_v56 }
  0x38   : > { %602 = vmatpush.msrb.mxu3 %v577_v57 }
  0x3a   : > { %603 = vmatpush.msrb.mxu3 %v576_v61 }
  0x3b   : > { %443 = vmatmul.bf16.gmra.mxu0 %v785_v10  ;;  %453 = vmatmul.bf16.gmra.mxu3 %v787_v11 }
  0xa8   : > { %v439_v14 = vpop.f32.mrf.mxu0 }
  0xa9   : > { %v440_v16 = vadd.f32 %v815_v15, %v439_v14 }
  0xab   : > { %v459_v19 = vmax.f32 %v440_v16, 0.0 }
  0xae   : > { %v449_v23 = vpop.f32.mrf.mxu3 }
  0xaf   : > { %v450_v31 = vadd.f32 %v815_v15, %v449_v23  ;;  %v613_v23 = vld [vmem:[%s1013_s7 + $0x20] sm:$0xff] }
  0xb0   : > { %v441_v17 = vpop.f32.mrf.mxu0 }
  0xb1   : > { %v442_v18 = vadd.f32 %v815_v15, %v441_v17  ;;  %v463_v34 = vmax.f32 %v450_v31, 0.0 }
  0xb3   : > { %v460_v20 = vmax.f32 %v442_v18, 0.0  ;;  %v827_v18 = vmov 0.0  }
  0xb5   : > { %v467_v21 = vpack.c.bf16 %v460_v20, %v459_v19  ;;  %v551_v19 = vsel %vm550_vm3, 0.015625, %v827_v18  ;;  %v616_v20 = vld [vmem:[%s1013_s7 + $0x38] sm:$0xff] }
  0xb6   : > { %v451_v30 = vpop.f32.mrf.mxu3 }
  0xb7   : > { %774 = vmatmul.msk.bf16.vlgmr.msra.gmra.mxu1 %vm491_vm0, %v467_v21  ;;  %v452_v32 = vadd.f32 %v815_v15, %v451_v30  ;;  %v615_v21 = vld [vmem:[%s1013_s7 + $0x30] sm:$0xff] }
  0xb8   : > { %v444_v22 = vpop.f32.mrf.mxu0 }
  0xb9   : > { %v445_v24 = vadd.f32 %v815_v15, %v444_v22  ;;  %v464_v35 = vmax.f32 %v452_v32, 0.0  ;;  %v614_v22 = vld [vmem:[%s1013_s7 + $0x28] sm:$0xff] }
  0xbb   : > { %v461_v27 = vmax.f32 %v445_v24, 0.0  ;;  %v469_v36 = vpack.c.bf16 %v464_v35, %v463_v34  ;;  %v612_v24 = vld [vmem:[%s1013_s7 + $0x18] sm:$0xff] }
  0xbe   : > { %v454_v33 = vpop.f32.mrf.mxu3 }
  0xbf   : > { %v455_v38 = vadd.f32 %v815_v15, %v454_v33  ;;  %v617_v33 = vld [vmem:[%s1014_s8] sm:$0x1] }
  0xc0   : > { %v446_v25 = vpop.f32.mrf.mxu0 }
  0xc1   : > { %v447_v26 = vadd.f32 %v815_v15, %v446_v25  ;;  %v465_v40 = vmax.f32 %v455_v38, 0.0 }
  0xc3   : > { %v462_v28 = vmax.f32 %v447_v26, 0.0  ;;  %v611_v26 = vld [vmem:[%s1013_s7 + $0x10] sm:$0xff] }
  0xc5   : > { %v468_v29 = vpack.c.bf16 %v462_v28, %v461_v27  ;;  %v610_v27 = vld [vmem:[%s1013_s7 + $0x8] sm:$0xff]  ;;  %v609_v28 = vld [vmem:[%s1013_s7] sm:$0xff] }
  0xc6   : > { %v456_v37 = vpop.f32.mrf.mxu3 }
  0xc7   : > { %775 = vmatmul.msk.bf16.gmra.mxu1 %vm491_vm0, %v468_v29  ;;  %v457_v39 = vadd.f32 %v815_v15, %v456_v37  ;;  %v584_v29 = vld [vmem:[%s1012_s6] sm:$0x1] }
  0xc9   : > { %v466_v41 = vmax.f32 %v457_v39, 0.0 }
  0xcb   : > { %v470_v42 = vpack.c.bf16 %v466_v41, %v465_v40 }
  0xd7   : > { %776 = vmatmul.msk.bf16.gmra.mxu1 %vm491_vm0, %v469_v36 }
  0xe7   : > { %777 = vmatmul.msk.bf16.gmra.mxu1 %vm491_vm0, %v470_v42 }
 0x134   : > { %v513_v43 = vpop.f32.mrf.mxu1 }
 0x135   : > { %v514_v14 = vadd.f32 %v816_v58, %v513_v43 }
 0x137   : > { %v533_v17 = vmax.f32 %v514_v14, 0.0 }
 0x13c   : > { %v515_v44 = vpop.f32.mrf.mxu1 }
 0x13d   : > { %v516_v12 = vadd.f32 %v816_v58, %v515_v44 }
 0x13f   : > { %v534_v16 = vmax.f32 %v516_v12, 0.0 }
 0x144   : > { %v518_v45 = vpop.f32.mrf.mxu1 }
 0x145   : > { %v519_v10 = vadd.f32 %v816_v58, %v518_v45 }
 0x147   : > { %v535_v15 = vmax.f32 %v519_v10, 0.0 }
 0x14c   : > { %v520_v46 = vpop.f32.mrf.mxu1 }
 0x14d   : > { %v521_v5 = vadd.f32 %v816_v58, %v520_v46 }
 0x14f   : > { %v536_v13 = vmax.f32 %v521_v5, 0.0 }
 0x154   : > { %v523_v47 = vpop.f32.mrf.mxu1 }
 0x155   : > { %v524_v3 = vadd.f32 %v816_v58, %v523_v47 }
 0x157   : > { %v537_v11 = vmax.f32 %v524_v3, 0.0 }
 0x15c   : > { %v525_v48 = vpop.f32.mrf.mxu1 }
 0x15d   : > { %v526_v0 = vadd.f32 %v816_v58, %v525_v48 }
 0x15f   : > { %v538_v6 = vmax.f32 %v526_v0, 0.0 }
 0x164   : > { %v528_v52 = vpop.f32.mrf.mxu1 }
 0x165   : > { %v529_v62 = vadd.f32 %v816_v58, %v528_v52 }
 0x167   : > { %v539_v4 = vmax.f32 %v529_v62, 0.0 }
 0x16c   : > { %v530_v60 = vpop.f32.mrf.mxu1 }
 0x16d   : > { %v531_v63 = vadd.f32 %v816_v58, %v530_v60 }
 0x16f   : > { %v540_v1 = vmax.f32 %v531_v63, 0.0 }
 0x171   : > { %564 = vmatpush.msra.mxu2 %v540_v1 }
 0x173   : > { %565 = vmatpush.msra.mxu2 %v539_v4 }
 0x175   : > { %566 = vmatpush.msra.mxu2 %v538_v6 }
 0x177   : > { %567 = vmatpush.msra.mxu2 %v537_v11 }
 0x179   : > { %568 = vmatpush.msra.mxu2 %v536_v13 }
 0x17b   : > { %569 = vmatpush.msra.mxu2 %v535_v15 }
 0x17d   : > { %570 = vmatpush.msra.mxu2 %v534_v16 }
 0x17f   : > { %571 = vmatpush.msra.mxu2 %v533_v17 }
 0x180   : > { %778 = vmatmul.msk.f32.vlgmr.msra.gmra.mxu2 %vm552_vm4, %v551_v19 }
 0x181   : > { %629 = vmatpush.msrb.mxu2 %v616_v20 }
 0x183   : > { %630 = vmatpush.msrb.mxu2 %v615_v21 }
 0x185   : > { %631 = vmatpush.msrb.mxu2 %v614_v22 }
 0x187   : > { %632 = vmatpush.msrb.mxu2 %v613_v23 }
 0x189   : > { %633 = vmatpush.msrb.mxu2 %v612_v24 }
 0x18b   : > { %634 = vmatpush.msrb.mxu2 %v611_v26 }
 0x18d   : > { %635 = vmatpush.msrb.mxu2 %v610_v27 }
 0x18f   : > { %636 = vmatpush.msrb.mxu2 %v609_v28 }
 0x203   : > { %v573_v25 = vpop.f32.mrf.mxu2 }
 0x204   : > { %779 = vmatmul.msk.f32.vlgmr.msrb.gmra.mxu3 %vm552_vm4, %v573_v25 }
 0x287   : > { %v605_v30 = vpop.f32.mrf.mxu3 }
 0x288   : > { %v606_v31 = vadd.f32 %v605_v30, %v584_v29 }
 0x28a   : > { %v608_v32 = vmax.f32 %v606_v31, 0.0 }
 0x28c   : > { %780 = vmatmul.msk.f32.vlgmr.msrb.gmra.mxu2 %vm552_vm4, %v608_v32 }
 0x30f   : > { %v638_v34 = vpop.f32.mrf.mxu2 }
 0x310   : > { %v639_v35 = vadd.f32 %v638_v34, %v617_v33 }
 0x312   : > { %v644_v37 = vmul.f32 %v639_v35, %v639_v35 }
 0x314   : > { %v645_v38 = vsel %vm989_vm7, %v644_v37, 0.0 }
 0x315   : > { %v647_v39 = vsel %vm646_vm8, %v645_v38, 0.0 }
 0x316   : > { %648 = vadd.xlane.f32.xlu0 %v647_v39 }
 0x389   : > { %v649_v40 = vpop.xlane.xlu0 %648 }
 0x38a   : > { %v650_v41 = vadd.f32 1e-12, %v649_v40 }
 0x38c   : > { %817 = vrsqrt.f32 %v650_v41  ;;  %vm657_vm10 = vweird.f32 %v650_v41 }
 0x392   : > { %v818_v42 = vpop.eup %817 }
 0x393   : > { %v652_v43 = vmul.f32 %v818_v42, %v650_v41  ;;  %vm658_vm9 = vweird.f32 %v818_v42 }
 0x394   : > { %vm659_vm11 = vmor %vm657_vm10, %vm658_vm9 }
 0x395   : > { %v653_v44 = vmul.f32 %v818_v42, %v652_v43 }
 0x397   : > { %v654_v45 = vmul.f32 0.5, %v653_v44 }
 0x399   : > { %v655_v46 = vsub.f32 1.5, %v654_v45 }
 0x39b   : > { %v656_v47 = vmul.f32 %v818_v42, %v655_v46 }
 0x39d   : > { %v660_v48 = vsel %vm659_vm11, %v818_v42, %v656_v47 }
 0x39e   : > { %v661_v49 = vmul.f32 %v660_v48, %v639_v35 }
 0x3a0   : > { %v662_v50 = vsel %vm989_vm7, %v661_v49, %v639_v35 }
 0x3a1   : > { %663 = vst.msk [vmem:[%s328_s20] sm:$0x1] %vm646_vm8, %v662_v50 }
 0x3a2 PF: > { %s19_s30 = sadd.s32 1, %s825_s30  }
 0x3a3   : > { %p16_p4 = scmp.ge.s32.totalorder %s19_s30, 4  }
 0x3a5   :  { %18 = sbr.rel (!%p16_p4) target bundleno = 1 (0x1), region = 86 }

</bundles_post_ra>
